<compile_context>
chip_gen: v7x
topology: tpu7x:2x2x1
jax: 0.10.0
libtpu: 0.0.40
codegen_flags: <defaults>
</compile_context>

<pallas_src>
import functools

import jax
import jax.numpy as jnp
from jax.experimental import pallas as pl
from jax.experimental.pallas import tpu as pltpu


# -----------------------------------------------------------------------------
# Pallas kernel
# -----------------------------------------------------------------------------
def _gin_block_kernel(n_gin_layers, half, x_ref, *refs):
    """Kernel body.

    Args:
      n_gin_layers: static number of GIN affine-coupling layers.
      half: static C // 2 (channel split size).
      x_ref: (C, B_TILE) input block in VMEM (channels on sublanes, batch on
        lanes).
      *refs: 6 * n_gin_layers parameter refs (w1, b1, w2, b2, w3, b3 per GIN
        layer; weights are (out, in), biases are (out, 1)) followed by the
        (C, B_TILE) output ref.
    """
    out_ref = refs[-1]
    params = refs[:-1]

    x = x_ref[...].astype(jnp.float32)           # (C, Bt)
    m = half - 1                                  # = (C - 1) // 2

    # Carry each channel-half as (main, last) row pieces to avoid concatenates.
    x0_main = x[:m, :]                            # (half-1, Bt)
    x0_last = x[m:half, :]                        # (1, Bt)
    x1_main = x[half:half + m, :]                 # (half-1, Bt)
    x1_last = x[half + m:, :]                     # (1, Bt)

    for l in range(n_gin_layers):
        w1, b1, w2, b2, w3, b3 = params[6 * l: 6 * l + 6]
        w1 = w1[...]; b1 = b1[...]
        w2 = w2[...]; b2 = b2[...]
        w3 = w3[...]; b3 = b3[...]

        # --- 3-layer MLP on x0 = [x0_main; x0_last] (MXU matmuls, VPU relu) ---
        # W1 @ x0 done piecewise: dense part on MXU, last column as a cheap
        # rank-1 broadcast multiply-add on the VPU (no sublane concat needed).
        h = jnp.dot(w1[:, :m], x0_main, preferred_element_type=jnp.float32)
        h = h + w1[:, m:] * x0_last + b1          # (H, Bt)
        h = jnp.maximum(h, 0.0)
        h = jnp.dot(w2, h, preferred_element_type=jnp.float32) + b2
        h = jnp.maximum(h, 0.0)
        st = jnp.dot(w3, h, preferred_element_type=jnp.float32) + b3   # (C-1, Bt)

        # --- affine coupling with volume-preserving last log-scale ---------
        s = 0.1 * jnp.tanh(st[:m, :])             # (half-1, Bt)   (EUP)
        t = st[m:, :]                             # (half, Bt)
        s_last = -jnp.sum(s, axis=0, keepdims=True)   # (1, Bt)

        y_main = x1_main * jnp.exp(s) + t[:m, :]
        y_last = x1_last * jnp.exp(s_last) + t[m:, :]

        # y = [transformed, x0]: swap roles for the next coupling layer.
        x1_main, x1_last = x0_main, x0_last
        x0_main, x0_last = y_main, y_last

    # Lane-dense stores; sublane slices are static.
    dt = out_ref.dtype
    out_ref[:m, :] = x0_main.astype(dt)
    out_ref[m:half, :] = x0_last.astype(dt)
    out_ref[half:half + m, :] = x1_main.astype(dt)
    out_ref[half + m:, :] = x1_last.astype(dt)


# -----------------------------------------------------------------------------
# Wrapper
# -----------------------------------------------------------------------------
def gin_block_forward(x, params, *, b_tile=128):
    """Runs the GINBlock forward pass in one Pallas call.

    Args:
      x: (B, C) float32 input, C even and >= 4.
      params: list (one entry per GIN layer) of tuples
        (w1 (H, C/2), b1 (H, 1), w2 (H, H), b2 (H, 1),
         w3 (C-1, H), b3 (C-1, 1))  -- PyTorch (out_features, in_features).
    """
    b, c = x.shape
    assert c % 2 == 0 and c >= 4, "in_channels must be even and >= 4"
    half = c // 2

    flat = []
    for layer_params in params:
        flat.extend(layer_params)

    # Batch on the lane axis -> lane-dense matmuls and unmasked stores.
    x_t = x.T                                     # (C, B)

    bt = b if b < b_tile else b_tile
    grid = (pl.cdiv(b, bt),)

    kernel = functools.partial(_gin_block_kernel, len(params), half)

    in_specs = [pl.BlockSpec((c, bt), lambda i: (0, i))]
    # Weights/biases: full-extent blocks, constant index_map -> VMEM-resident.
    in_specs += [pl.BlockSpec(p.shape, lambda i: (0, 0)) for p in flat]

    hdim = params[0][0].shape[0]
    n_layers = len(params)
    flops = 2 * b * n_layers * (half * hdim + hdim * hdim + hdim * (c - 1))
    transcendentals = b * n_layers * (c - 1)
    bytes_accessed = 2 * b * c * 4 + sum(int(p.size) * 4 for p in flat)

    y_t = pl.pallas_call(
        kernel,
        out_shape=jax.ShapeDtypeStruct((c, b), x.dtype),
        grid=grid,
        in_specs=in_specs,
        out_specs=pl.BlockSpec((c, bt), lambda i: (0, i)),
        compiler_params=pltpu.CompilerParams(
            dimension_semantics=("parallel",)),   # v7x: shard batch tiles over 2 TCs
        cost_estimate=pl.CostEstimate(
            flops=flops,
            transcendentals=transcendentals,
            bytes_accessed=bytes_accessed),
    )(x_t, *flat)

    return y_t.T


# -----------------------------------------------------------------------------
# Deterministic parameter init (mimics torch.nn.Linear default: U(-k, k))
# -----------------------------------------------------------------------------
def _init_linear(key, fan_in, fan_out):
    kw, kb = jax.random.split(key)
    bound = 1.0 / jnp.sqrt(jnp.float32(fan_in))
    w = jax.random.uniform(kw, (fan_out, fan_in), jnp.float32, -bound, bound)
    b = jax.random.uniform(kb, (fan_out, 1), jnp.float32, -bound, bound)
    return w, b


def init_gin_block_params(key, in_channels, layers_per_block=2, hidden_size=32):
    assert in_channels % 2 == 0 and in_channels >= 4
    split = in_channels // 2
    out_dim = 2 * split - 1
    params = []
    for _ in range(layers_per_block):
        key, k1, k2, k3 = jax.random.split(key, 4)
        w1, b1 = _init_linear(k1, split, hidden_size)
        w2, b2 = _init_linear(k2, hidden_size, hidden_size)
        w3, b3 = _init_linear(k3, hidden_size, out_dim)
        params.append((w1, b1, w2, b2, w3, b3))
    return params


# -----------------------------------------------------------------------------
# Pure-JAX reference (mirrors the PyTorch semantics exactly)
# -----------------------------------------------------------------------------
def gin_block_reference(x, params):
    c = x.shape[-1]
    half = c // 2
    for (w1, b1, w2, b2, w3, b3) in params:
        x0, x1 = x[..., :half], x[..., half:]
        h = jax.nn.relu(x0 @ w1.T + b1[:, 0])
        h = jax.nn.relu(h @ w2.T + b2[:, 0])
        st = h @ w3.T + b3[:, 0]
        n = st.shape[-1]
        s, t = st[..., : n // 2], st[..., n // 2:]
        s = 0.1 * jnp.tanh(s)
        s = jnp.concatenate([s, -jnp.sum(s, axis=-1, keepdims=True)], axis=-1)
        transformed = x1 * jnp.exp(s) + t
        x = jnp.concatenate([transformed, x0], axis=-1)
    return x


# -----------------------------------------------------------------------------
if __name__ == "__main__":
    B = 256          # batch (lane axis after transpose; 2 grid steps of 128)
    C = 8            # in_channels (must be even, >= 4)
    HIDDEN = 32      # hidden_size of coupling MLPs
    LAYERS_PER_BLOCK = 2

    key = jax.random.PRNGKey(0)
    kx, kp = jax.random.split(key)
    x = jax.random.normal(kx, (B, C), jnp.float32)
    params = init_gin_block_params(kp, C, LAYERS_PER_BLOCK, HIDDEN)

    y = gin_block_forward(x, params)
    y = jax.block_until_ready(y)

    y_ref = gin_block_reference(x, params)
    assert y.shape == (B, C)
    assert jnp.allclose(y, y_ref, atol=1e-4, rtol=1e-4), "mismatch vs reference"

    print("KERNEL_OK")
</pallas_src>

<mosaic_0001>
module attributes {stable_mosaic.version = 11 : i64} {
  func.func @_gin_block_kernel(%arg0: i32, %arg1: memref<8x128xf32, #tpu.memory_space<vmem>>, %arg2: memref<32x4xf32, #tpu.memory_space<vmem>>, %arg3: memref<32x1xf32, #tpu.memory_space<vmem>>, %arg4: memref<32x32xf32, #tpu.memory_space<vmem>>, %arg5: memref<32x1xf32, #tpu.memory_space<vmem>>, %arg6: memref<7x32xf32, #tpu.memory_space<vmem>>, %arg7: memref<7x1xf32, #tpu.memory_space<vmem>>, %arg8: memref<32x4xf32, #tpu.memory_space<vmem>>, %arg9: memref<32x1xf32, #tpu.memory_space<vmem>>, %arg10: memref<32x32xf32, #tpu.memory_space<vmem>>, %arg11: memref<32x1xf32, #tpu.memory_space<vmem>>, %arg12: memref<7x32xf32, #tpu.memory_space<vmem>>, %arg13: memref<7x1xf32, #tpu.memory_space<vmem>>, %arg14: memref<8x128xf32, #tpu.memory_space<vmem>>) attributes {dimension_semantics = [#tpu.dimension_semantics<parallel>], iteration_bounds = array<i64: 2>, scalar_prefetch = 0 : i64, scratch_operands = 0 : i64, tpu.core_type = #tpu.core_type<tc>, window_params = [{transform_indices = @transform_0, window_bounds = array<i64: 8, 128>}, {pipeline_mode = #tpu.pipeline_mode<synchronous>, transform_indices = @transform_1, window_bounds = array<i64: 32, 4>}, {pipeline_mode = #tpu.pipeline_mode<synchronous>, transform_indices = @transform_2, window_bounds = array<i64: 32, 1>}, {pipeline_mode = #tpu.pipeline_mode<synchronous>, transform_indices = @transform_3, window_bounds = array<i64: 32, 32>}, {pipeline_mode = #tpu.pipeline_mode<synchronous>, transform_indices = @transform_4, window_bounds = array<i64: 32, 1>}, {pipeline_mode = #tpu.pipeline_mode<synchronous>, transform_indices = @transform_5, window_bounds = array<i64: 7, 32>}, {pipeline_mode = #tpu.pipeline_mode<synchronous>, transform_indices = @transform_6, window_bounds = array<i64: 7, 1>}, {pipeline_mode = #tpu.pipeline_mode<synchronous>, transform_indices = @transform_7, window_bounds = array<i64: 32, 4>}, {pipeline_mode = #tpu.pipeline_mode<synchronous>, transform_indices = @transform_8, window_bounds = array<i64: 32, 1>}, {pipeline_mode = #tpu.pipeline_mode<synchronous>, transform_indices = @transform_9, window_bounds = array<i64: 32, 32>}, {pipeline_mode = #tpu.pipeline_mode<synchronous>, transform_indices = @transform_10, window_bounds = array<i64: 32, 1>}, {pipeline_mode = #tpu.pipeline_mode<synchronous>, transform_indices = @transform_11, window_bounds = array<i64: 7, 32>}, {pipeline_mode = #tpu.pipeline_mode<synchronous>, transform_indices = @transform_12, window_bounds = array<i64: 7, 1>}, {transform_indices = @transform_13, window_bounds = array<i64: 8, 128>}]} {
    %c0 = arith.constant 0 : index
    %c0_0 = arith.constant 0 : index
    %0 = vector.load %arg1[%c0, %c0_0] : memref<8x128xf32, #tpu.memory_space<vmem>>, vector<8x128xf32>
    %1 = vector.extract_strided_slice %0 {offsets = [0, 0], sizes = [3, 128], strides = [1, 1]} : vector<8x128xf32> to vector<3x128xf32>
    %2 = vector.extract_strided_slice %0 {offsets = [3, 0], sizes = [1, 128], strides = [1, 1]} : vector<8x128xf32> to vector<1x128xf32>
    %3 = vector.extract_strided_slice %0 {offsets = [4, 0], sizes = [3, 128], strides = [1, 1]} : vector<8x128xf32> to vector<3x128xf32>
    %4 = vector.extract_strided_slice %0 {offsets = [7, 0], sizes = [1, 128], strides = [1, 1]} : vector<8x128xf32> to vector<1x128xf32>
    %c0_1 = arith.constant 0 : index
    %c0_2 = arith.constant 0 : index
    %5 = vector.load %arg2[%c0_1, %c0_2] : memref<32x4xf32, #tpu.memory_space<vmem>>, vector<32x4xf32>
    %c0_3 = arith.constant 0 : index
    %c0_4 = arith.constant 0 : index
    %6 = vector.load %arg3[%c0_3, %c0_4] : memref<32x1xf32, #tpu.memory_space<vmem>>, vector<32x1xf32>
    %c0_5 = arith.constant 0 : index
    %c0_6 = arith.constant 0 : index
    %7 = vector.load %arg4[%c0_5, %c0_6] : memref<32x32xf32, #tpu.memory_space<vmem>>, vector<32x32xf32>
    %c0_7 = arith.constant 0 : index
    %c0_8 = arith.constant 0 : index
    %8 = vector.load %arg5[%c0_7, %c0_8] : memref<32x1xf32, #tpu.memory_space<vmem>>, vector<32x1xf32>
    %c0_9 = arith.constant 0 : index
    %c0_10 = arith.constant 0 : index
    %9 = vector.load %arg6[%c0_9, %c0_10] : memref<7x32xf32, #tpu.memory_space<vmem>>, vector<7x32xf32>
    %c0_11 = arith.constant 0 : index
    %c0_12 = arith.constant 0 : index
    %10 = vector.load %arg7[%c0_11, %c0_12] : memref<7x1xf32, #tpu.memory_space<vmem>>, vector<7x1xf32>
    %11 = vector.extract_strided_slice %5 {offsets = [0, 0], sizes = [32, 3], strides = [1, 1]} : vector<32x4xf32> to vector<32x3xf32>
    %cst = arith.constant dense<0.000000e+00> : vector<32x128xf32>
    %12 = tpu.matmul %11, %1, %cst {dimension_numbers = #tpu.dot_dimension_numbers<[1], [0], [0], [1], [0, 0, 1, 1], [], []>} : vector<32x3xf32>, vector<3x128xf32>, vector<32x128xf32> -> vector<32x128xf32>
    %13 = vector.extract_strided_slice %5 {offsets = [0, 3], sizes = [32, 1], strides = [1, 1]} : vector<32x4xf32> to vector<32x1xf32>
    %14 = vector.broadcast %13 : vector<32x1xf32> to vector<32x128xf32>
    %15 = vector.broadcast %2 : vector<1x128xf32> to vector<32x128xf32>
    %16 = arith.mulf %14, %15 : vector<32x128xf32>
    %17 = arith.addf %12, %16 : vector<32x128xf32>
    %18 = vector.broadcast %6 : vector<32x1xf32> to vector<32x128xf32>
    %19 = arith.addf %17, %18 : vector<32x128xf32>
    %cst_13 = arith.constant 0.000000e+00 : f32
    %20 = vector.broadcast %cst_13 : f32 to vector<32x128xf32>
    %21 = arith.maximumf %19, %20 : vector<32x128xf32>
    %cst_14 = arith.constant dense<0.000000e+00> : vector<32x128xf32>
    %22 = tpu.matmul %7, %21, %cst_14 {dimension_numbers = #tpu.dot_dimension_numbers<[1], [0], [0], [1], [0, 0, 1, 1], [], []>} : vector<32x32xf32>, vector<32x128xf32>, vector<32x128xf32> -> vector<32x128xf32>
    %23 = vector.broadcast %8 : vector<32x1xf32> to vector<32x128xf32>
    %24 = arith.addf %22, %23 : vector<32x128xf32>
    %cst_15 = arith.constant 0.000000e+00 : f32
    %25 = vector.broadcast %cst_15 : f32 to vector<32x128xf32>
    %26 = arith.maximumf %24, %25 : vector<32x128xf32>
    %cst_16 = arith.constant dense<0.000000e+00> : vector<7x128xf32>
    %27 = tpu.matmul %9, %26, %cst_16 {dimension_numbers = #tpu.dot_dimension_numbers<[1], [0], [0], [1], [0, 0, 1, 1], [], []>} : vector<7x32xf32>, vector<32x128xf32>, vector<7x128xf32> -> vector<7x128xf32>
    %28 = vector.broadcast %10 : vector<7x1xf32> to vector<7x128xf32>
    %29 = arith.addf %27, %28 : vector<7x128xf32>
    %30 = vector.extract_strided_slice %29 {offsets = [0, 0], sizes = [3, 128], strides = [1, 1]} : vector<7x128xf32> to vector<3x128xf32>
    %31 = math.tanh %30 : vector<3x128xf32>
    %cst_17 = arith.constant 1.000000e-01 : f32
    %32 = vector.broadcast %cst_17 : f32 to vector<3x128xf32>
    %33 = arith.mulf %32, %31 : vector<3x128xf32>
    %34 = vector.extract_strided_slice %29 {offsets = [3, 0], sizes = [4, 128], strides = [1, 1]} : vector<7x128xf32> to vector<4x128xf32>
    %cst_18 = arith.constant dense<0.000000e+00> : vector<128xf32>
    %35 = vector.multi_reduction <add>, %33, %cst_18 [0] : vector<3x128xf32> to vector<128xf32>
    %36 = vector.shape_cast %35 : vector<128xf32> to vector<1x128xf32>
    %cst_19 = arith.constant 0.000000e+00 : f32
    %37 = vector.broadcast %cst_19 : f32 to vector<1x128xf32>
    %38 = arith.subf %37, %36 : vector<1x128xf32>
    %39 = math.exp %33 : vector<3x128xf32>
    %40 = arith.mulf %3, %39 : vector<3x128xf32>
    %41 = vector.extract_strided_slice %34 {offsets = [0, 0], sizes = [3, 128], strides = [1, 1]} : vector<4x128xf32> to vector<3x128xf32>
    %42 = arith.addf %40, %41 : vector<3x128xf32>
    %43 = math.exp %38 : vector<1x128xf32>
    %44 = arith.mulf %4, %43 : vector<1x128xf32>
    %45 = vector.extract_strided_slice %34 {offsets = [3, 0], sizes = [1, 128], strides = [1, 1]} : vector<4x128xf32> to vector<1x128xf32>
    %46 = arith.addf %44, %45 : vector<1x128xf32>
    %c0_20 = arith.constant 0 : index
    %c0_21 = arith.constant 0 : index
    %47 = vector.load %arg8[%c0_20, %c0_21] : memref<32x4xf32, #tpu.memory_space<vmem>>, vector<32x4xf32>
    %c0_22 = arith.constant 0 : index
    %c0_23 = arith.constant 0 : index
    %48 = vector.load %arg9[%c0_22, %c0_23] : memref<32x1xf32, #tpu.memory_space<vmem>>, vector<32x1xf32>
    %c0_24 = arith.constant 0 : index
    %c0_25 = arith.constant 0 : index
    %49 = vector.load %arg10[%c0_24, %c0_25] : memref<32x32xf32, #tpu.memory_space<vmem>>, vector<32x32xf32>
    %c0_26 = arith.constant 0 : index
    %c0_27 = arith.constant 0 : index
    %50 = vector.load %arg11[%c0_26, %c0_27] : memref<32x1xf32, #tpu.memory_space<vmem>>, vector<32x1xf32>
    %c0_28 = arith.constant 0 : index
    %c0_29 = arith.constant 0 : index
    %51 = vector.load %arg12[%c0_28, %c0_29] : memref<7x32xf32, #tpu.memory_space<vmem>>, vector<7x32xf32>
    %c0_30 = arith.constant 0 : index
    %c0_31 = arith.constant 0 : index
    %52 = vector.load %arg13[%c0_30, %c0_31] : memref<7x1xf32, #tpu.memory_space<vmem>>, vector<7x1xf32>
    %53 = vector.extract_strided_slice %47 {offsets = [0, 0], sizes = [32, 3], strides = [1, 1]} : vector<32x4xf32> to vector<32x3xf32>
    %cst_32 = arith.constant dense<0.000000e+00> : vector<32x128xf32>
    %54 = tpu.matmul %53, %42, %cst_32 {dimension_numbers = #tpu.dot_dimension_numbers<[1], [0], [0], [1], [0, 0, 1, 1], [], []>} : vector<32x3xf32>, vector<3x128xf32>, vector<32x128xf32> -> vector<32x128xf32>
    %55 = vector.extract_strided_slice %47 {offsets = [0, 3], sizes = [32, 1], strides = [1, 1]} : vector<32x4xf32> to vector<32x1xf32>
    %56 = vector.broadcast %55 : vector<32x1xf32> to vector<32x128xf32>
    %57 = vector.broadcast %46 : vector<1x128xf32> to vector<32x128xf32>
    %58 = arith.mulf %56, %57 : vector<32x128xf32>
    %59 = arith.addf %54, %58 : vector<32x128xf32>
    %60 = vector.broadcast %48 : vector<32x1xf32> to vector<32x128xf32>
    %61 = arith.addf %59, %60 : vector<32x128xf32>
    %cst_33 = arith.constant 0.000000e+00 : f32
    %62 = vector.broadcast %cst_33 : f32 to vector<32x128xf32>
    %63 = arith.maximumf %61, %62 : vector<32x128xf32>
    %cst_34 = arith.constant dense<0.000000e+00> : vector<32x128xf32>
    %64 = tpu.matmul %49, %63, %cst_34 {dimension_numbers = #tpu.dot_dimension_numbers<[1], [0], [0], [1], [0, 0, 1, 1], [], []>} : vector<32x32xf32>, vector<32x128xf32>, vector<32x128xf32> -> vector<32x128xf32>
    %65 = vector.broadcast %50 : vector<32x1xf32> to vector<32x128xf32>
    %66 = arith.addf %64, %65 : vector<32x128xf32>
    %cst_35 = arith.constant 0.000000e+00 : f32
    %67 = vector.broadcast %cst_35 : f32 to vector<32x128xf32>
    %68 = arith.maximumf %66, %67 : vector<32x128xf32>
    %cst_36 = arith.constant dense<0.000000e+00> : vector<7x128xf32>
    %69 = tpu.matmul %51, %68, %cst_36 {dimension_numbers = #tpu.dot_dimension_numbers<[1], [0], [0], [1], [0, 0, 1, 1], [], []>} : vector<7x32xf32>, vector<32x128xf32>, vector<7x128xf32> -> vector<7x128xf32>
    %70 = vector.broadcast %52 : vector<7x1xf32> to vector<7x128xf32>
    %71 = arith.addf %69, %70 : vector<7x128xf32>
    %72 = vector.extract_strided_slice %71 {offsets = [0, 0], sizes = [3, 128], strides = [1, 1]} : vector<7x128xf32> to vector<3x128xf32>
    %73 = math.tanh %72 : vector<3x128xf32>
    %cst_37 = arith.constant 1.000000e-01 : f32
    %74 = vector.broadcast %cst_37 : f32 to vector<3x128xf32>
    %75 = arith.mulf %74, %73 : vector<3x128xf32>
    %76 = vector.extract_strided_slice %71 {offsets = [3, 0], sizes = [4, 128], strides = [1, 1]} : vector<7x128xf32> to vector<4x128xf32>
    %cst_38 = arith.constant dense<0.000000e+00> : vector<128xf32>
    %77 = vector.multi_reduction <add>, %75, %cst_38 [0] : vector<3x128xf32> to vector<128xf32>
    %78 = vector.shape_cast %77 : vector<128xf32> to vector<1x128xf32>
    %cst_39 = arith.constant 0.000000e+00 : f32
    %79 = vector.broadcast %cst_39 : f32 to vector<1x128xf32>
    %80 = arith.subf %79, %78 : vector<1x128xf32>
    %81 = math.exp %75 : vector<3x128xf32>
    %82 = arith.mulf %1, %81 : vector<3x128xf32>
    %83 = vector.extract_strided_slice %76 {offsets = [0, 0], sizes = [3, 128], strides = [1, 1]} : vector<4x128xf32> to vector<3x128xf32>
    %84 = arith.addf %82, %83 : vector<3x128xf32>
    %85 = math.exp %80 : vector<1x128xf32>
    %86 = arith.mulf %2, %85 : vector<1x128xf32>
    %87 = vector.extract_strided_slice %76 {offsets = [3, 0], sizes = [1, 128], strides = [1, 1]} : vector<4x128xf32> to vector<1x128xf32>
    %88 = arith.addf %86, %87 : vector<1x128xf32>
    %c0_40 = arith.constant 0 : index
    %c0_41 = arith.constant 0 : index
    %89 = vector.load %arg14[%c0_40, %c0_41] : memref<8x128xf32, #tpu.memory_space<vmem>>, vector<3x128xf32>
    tpu.vector_store %arg14[%c0_40, %c0_41], %84 {strides = array<i32>} : memref<8x128xf32, #tpu.memory_space<vmem>>, vector<3x128xf32>,
    %c3 = arith.constant 3 : index
    %c0_42 = arith.constant 0 : index
    %90 = vector.load %arg14[%c3, %c0_42] : memref<8x128xf32, #tpu.memory_space<vmem>>, vector<1x128xf32>
    tpu.vector_store %arg14[%c3, %c0_42], %88 {strides = array<i32>} : memref<8x128xf32, #tpu.memory_space<vmem>>, vector<1x128xf32>,
    %c4 = arith.constant 4 : index
    %c0_43 = arith.constant 0 : index
    %91 = vector.load %arg14[%c4, %c0_43] : memref<8x128xf32, #tpu.memory_space<vmem>>, vector<3x128xf32>
    tpu.vector_store %arg14[%c4, %c0_43], %42 {strides = array<i32>} : memref<8x128xf32, #tpu.memory_space<vmem>>, vector<3x128xf32>,
    %c7 = arith.constant 7 : index
    %c0_44 = arith.constant 0 : index
    %92 = vector.load %arg14[%c7, %c0_44] : memref<8x128xf32, #tpu.memory_space<vmem>>, vector<1x128xf32>
    tpu.vector_store %arg14[%c7, %c0_44], %46 {strides = array<i32>} : memref<8x128xf32, #tpu.memory_space<vmem>>, vector<1x128xf32>,
    return
  }
  func.func @transform_0(%arg0: i32) -> (i32, i32) {
    %c0_i32 = arith.constant 0 : i32
    %c0_i32_0 = arith.constant 0 : i32
    return %c0_i32, %arg0 : i32, i32
  }
  func.func @transform_1(%arg0: i32) -> (i32, i32) {
    %c0_i32 = arith.constant 0 : i32
    %c0_i32_0 = arith.constant 0 : i32
    %c0_i32_1 = arith.constant 0 : i32
    return %c0_i32, %c0_i32_0 : i32, i32
  }
  func.func @transform_2(%arg0: i32) -> (i32, i32) {
    %c0_i32 = arith.constant 0 : i32
    %c0_i32_0 = arith.constant 0 : i32
    %c0_i32_1 = arith.constant 0 : i32
    return %c0_i32, %c0_i32_0 : i32, i32
  }
  func.func @transform_3(%arg0: i32) -> (i32, i32) {
    %c0_i32 = arith.constant 0 : i32
    %c0_i32_0 = arith.constant 0 : i32
    %c0_i32_1 = arith.constant 0 : i32
    return %c0_i32, %c0_i32_0 : i32, i32
  }
  func.func @transform_4(%arg0: i32) -> (i32, i32) {
    %c0_i32 = arith.constant 0 : i32
    %c0_i32_0 = arith.constant 0 : i32
    %c0_i32_1 = arith.constant 0 : i32
    return %c0_i32, %c0_i32_0 : i32, i32
  }
  func.func @transform_5(%arg0: i32) -> (i32, i32) {
    %c0_i32 = arith.constant 0 : i32
    %c0_i32_0 = arith.constant 0 : i32
    %c0_i32_1 = arith.constant 0 : i32
    return %c0_i32, %c0_i32_0 : i32, i32
  }
  func.func @transform_6(%arg0: i32) -> (i32, i32) {
    %c0_i32 = arith.constant 0 : i32
    %c0_i32_0 = arith.constant 0 : i32
    %c0_i32_1 = arith.constant 0 : i32
    return %c0_i32, %c0_i32_0 : i32, i32
  }
  func.func @transform_7(%arg0: i32) -> (i32, i32) {
    %c0_i32 = arith.constant 0 : i32
    %c0_i32_0 = arith.constant 0 : i32
    %c0_i32_1 = arith.constant 0 : i32
    return %c0_i32, %c0_i32_0 : i32, i32
  }
  func.func @transform_8(%arg0: i32) -> (i32, i32) {
    %c0_i32 = arith.constant 0 : i32
    %c0_i32_0 = arith.constant 0 : i32
    %c0_i32_1 = arith.constant 0 : i32
    return %c0_i32, %c0_i32_0 : i32, i32
  }
  func.func @transform_9(%arg0: i32) -> (i32, i32) {
    %c0_i32 = arith.constant 0 : i32
    %c0_i32_0 = arith.constant 0 : i32
    %c0_i32_1 = arith.constant 0 : i32
    return %c0_i32, %c0_i32_0 : i32, i32
  }
  func.func @transform_10(%arg0: i32) -> (i32, i32) {
    %c0_i32 = arith.constant 0 : i32
    %c0_i32_0 = arith.constant 0 : i32
    %c0_i32_1 = arith.constant 0 : i32
    return %c0_i32, %c0_i32_0 : i32, i32
  }
  func.func @transform_11(%arg0: i32) -> (i32, i32) {
    %c0_i32 = arith.constant 0 : i32
    %c0_i32_0 = arith.constant 0 : i32
    %c0_i32_1 = arith.constant 0 : i32
    return %c0_i32, %c0_i32_0 : i32, i32
  }
  func.func @transform_12(%arg0: i32) -> (i32, i32) {
    %c0_i32 = arith.constant 0 : i32
    %c0_i32_0 = arith.constant 0 : i32
    %c0_i32_1 = arith.constant 0 : i32
    return %c0_i32, %c0_i32_0 : i32, i32
  }
  func.func @transform_13(%arg0: i32) -> (i32, i32) {
    %c0_i32 = arith.constant 0 : i32
    %c0_i32_0 = arith.constant 0 : i32
    return %c0_i32, %arg0 : i32, i32
  }
}

</mosaic_0001>

<bundles_post_ra>
// kernel: tpu_custom_call.1
= control target key start
LH: loop header
LB: loop body
LE: loop exit
PB: predicated region body
PF: predicated region fallthrough
CT: control target
= control target key end

     0   :  { %s1945_s0 = inlined_call_operand.vmem [shape: f32[8,256], index: 0, kind: input, shape index: {}]   ;;  %s1946_s1 = inlined_call_operand.vmem [shape: f32[32,4], index: 1, kind: input, shape index: {}]   ;;  %s1947_s2 = inlined_call_operand.vmem [shape: f32[32,1], index: 2, kind: input, shape index: {}]   ;;  %s1948_s3 = inlined_call_operand.vmem [shape: f32[32,32], index: 3, kind: input, shape index: {}]   ;;  %s1949_s4 = inlined_call_operand.vmem [shape: f32[32,1], index: 4, kind: input, shape index: {}]   ;;  %s1950_s5 = inlined_call_operand.vmem [shape: f32[7,32], index: 5, kind: input, shape index: {}]   ;;  %s1951_s6 = inlined_call_operand.vmem [shape: f32[7,1], index: 6, kind: input, shape index: {}]   ;;  %s1952_s7 = inlined_call_operand.vmem [shape: f32[32,4], index: 7, kind: input, shape index: {}]   ;;  %s1953_s8 = inlined_call_operand.vmem [shape: f32[32,1], index: 8, kind: input, shape index: {}]   ;;  %s1954_s9 = inlined_call_operand.vmem [shape: f32[32,32], index: 9, kind: input, shape index: {}]   ;;  %s1955_s10 = inlined_call_operand.vmem [shape: f32[32,1], index: 10, kind: input, shape index: {}]   ;;  %s1956_s11 = inlined_call_operand.vmem [shape: f32[7,32], index: 11, kind: input, shape index: {}]   ;;  %s1957_s12 = inlined_call_operand.vmem [shape: f32[7,1], index: 12, kind: input, shape index: {}]   ;;  %s1958_s13 = inlined_call_operand.hbm [shape: f32[8,256], index: 13, kind: output, shape index: {}]  }
   0x1   :  { %1960 = sst [smem:[#allocation7_spill]] %s1945_s0 }
   0x2   :  { %18 = vsyncpa [#allocation3], 0 }
   0x3   :  { %20 = vsyncpa [#allocation3 + $0x1], 0  ;;  %s1665_s25 = smov 0   ;;  %s1667_s26 = smov 0  }
   0x4   :  { %s1669_s27 = smov 0   ;;  %s1671_s28 = smov 0  }
   0x5 LB: > { %1961 = sst [smem:[#allocation5_spill]] %s1583_s27  ;;  %s1686_s29 = sadd.s32 4294967295, %s1587_s28   ;;  %s1587_s28 = sphi %s1671_s28, %s1970_s28   ;;  %s1583_s27 = sphi %s1669_s27, %s1967_s27   ;;  %s1579_s26 = sphi %s1667_s26, %s1969_s26   ;;  %s1575_s25 = sphi %s1665_s25, %s1968_s25  }
   0x6   : > { %s1301_s30 = sadd.s32 4294967294, %s1587_s28   ;;  %s1690_s14 = sadd.s32 1, %s1587_s28  }
   0x7   : > { %s311_s15 = sadd.s32 1, %s1583_s27  ;;  %s308_s16 = ssub.s32 %s1587_s28, %s1690_s14 }
   0x8   : > { %p321_p0 = scmp.ne.s32.totalorder %s1583_s27, %s1579_s26  ;;  %p309_p1 = scmp.eq.s32.totalorder %s308_s16, 0 }
   0x9   : > { %p322_p2 = scmp.eq.s32.totalorder %s1686_s29, 1  ;;  %p327_p3 = scmp.ne.s32.totalorder %s1579_s26, %s1575_s25 }
   0xa   : > { %p328_p4 = scmp.eq.s32.totalorder %s1301_s30, 1  ;;  %p1304_p7 = scmp.ge.s32.totalorder %s1587_s28, 1 }
   0xb   : > { %s1701_s17 = scalar_select %p309_p1, %s1583_s27, %s311_s15  }
   0xc   : > { %p1703_p5 = por %p322_p2, %p321_p0  ;;  %p1707_p6 = por %p328_p4, %p327_p3 }
   0xd   : > { %1962 = sst [smem:[#allocation6_spill]] %s1701_s17  ;;  %p389_p8 = scmp.lt.s32.totalorder %s1587_s28, 3 }
   0xf   : > { %p390_p9 = pnand %p1304_p7, %p389_p8 }
  0x10   : > { %p432_p10 = scmp.lt.s32.totalorder (!%p390_p9), %s1686_s29, 1  ;;  %v437_v0 = vld [vmem:[%s1946_s1] sm:$0xff] (!%p390_p9)  ;;  %vm483_vm0 = vcmask (!%p390_p9), 23552   ;;  %v439_v1 = vld [vmem:[%s1946_s1 + $0x10] sm:$0xff] (!%p390_p9)  ;;  %v1589_v2 = vmov (!%p390_p9), 3   ;;  %vm492_vm1 = vcmask (!%p390_p9), 1042432   ;;  %v475_v17 = vlaneseq (!%p390_p9) }
  0x11   : > { %393 = sbr.rel (%p390_p9) target bundleno = 1464 (0x5b8), region = 72  ;;  %1369 = vmatprep.mubr.msk.f32.mxu0 (!%p390_p9), %vm483_vm0, %v437_v0  ;;  %1506 = vset.pattern.permute.xlu1 (!%p390_p9), %v1589_v2  ;;  %s1965_s0 = sld [smem:[#allocation7_spill]] (!%p390_p9)  ;;  %v438_v4 = vld [vmem:[%s1946_s1 + $0x8] sm:$0xff] (!%p390_p9)  ;;  %v440_v5 = vld [vmem:[%s1946_s1 + $0x18] sm:$0xff] (!%p390_p9)  ;;  %v441_v7 = vld [vmem:[%s1947_s2] sm:$0xff] (!%p390_p9)  ;;  %v1590_v8 = vmov (!%p390_p9), 0  }
  0x12   : > { %1505 = vset.pattern.permute.xlu0 (!%p390_p9), %v1589_v2  ;;  %467 = vperm.xlu1 (!%p390_p9), %1506, %v439_v1   ;;  %v442_v6 = vld [vmem:[%s1947_s2 + $0x8] sm:$0xff] (!%p390_p9)  ;;  %v443_v9 = vld [vmem:[%s1947_s2 + $0x10] sm:$0xff] (!%p390_p9)  ;;  %v444_v10 = vld [vmem:[%s1947_s2 + $0x18] sm:$0xff] (!%p390_p9)  ;;  %vm629_vm2 = vcmask (!%p390_p9), 261120   ;;  %v1773_v18 = vshrl.u32 (!%p390_p9), %v475_v17, 7  ;;  %v1591_v54 = vmov (!%p390_p9), 0.0|0.0  }
  0x13   : > { %457 = vperm.xlu0 (!%p390_p9), %1505, %v437_v0   ;;  %v449_v11 = vld [vmem:[%s1949_s4] sm:$0xff] (!%p390_p9)  ;;  %v450_v12 = vld [vmem:[%s1949_s4 + $0x8] sm:$0xff] (!%p390_p9)  ;;  %v451_v13 = vld [vmem:[%s1949_s4 + $0x10] sm:$0xff] (!%p390_p9)  ;;  %vm1592_vm3 = vmmov (!%p390_p9), 0   ;;  %v1593_v55 = vmov (!%p390_p9), 0.0   ;;  %s429_s27 = sand.u32 (!%p390_p9), 1, %s1579_s26  }
  0x14   : > { %v452_v14 = vld [vmem:[%s1949_s4 + $0x18] sm:$0xff] (!%p390_p9)  ;;  %v454_v15 = vld [vmem:[%s1951_s6] sm:$0x7f] (!%p390_p9)  ;;  %v477_v21 = vsub.s32 (!%p390_p9), 3, %v1773_v18  ;;  %v446_v51 = vld [vmem:[%s1948_s3 + $0x8] sm:$0xff] (!%p390_p9)  ;;  %s1305_s15 = sshll.u32 (!%p390_p9), %s429_s27, 3 }
  0x15   : > { %v445_v16 = vld [vmem:[%s1948_s3] sm:$0xff] (!%p390_p9)  ;;  %v447_v52 = vld [vmem:[%s1948_s3 + $0x10] sm:$0xff] (!%p390_p9)  ;;  %v448_v53 = vld [vmem:[%s1948_s3 + $0x18] sm:$0xff] (!%p390_p9)  ;;  %s1853_s16 = scalar_lea.vmem (!%p390_p9), [#allocation2], %s1305_s15  ;;  %s1328_s23 = sshll.u32 (!%p390_p9), %s1686_s29, 7 }
  0x16   : > { %472 = vperm.xlu1 (!%p390_p9), %1506, %v440_v5   ;;  %1383 = vmatprep.mubr.msk.f32.mxu1 (!%p390_p9), %vm629_vm2, %v445_v16  ;;  %v1795_v56 = vld [vmem:[%s1952_s7 + $0x8] sm:$0xff] (!%p390_p9)  ;;  %v833_v57 = vld [vmem:[%s1952_s7] sm:$0xff] (!%p390_p9)  ;;  %v1804_v58 = vld [vmem:[%s1952_s7 + $0x10] sm:$0xff] (!%p390_p9)  ;;  %s1229_s15 = scalar_lea.sflag (!%p390_p9), [#allocation3], %s429_s27 }
  0x17   : > { %462 = vperm.xlu0 (!%p390_p9), %1505, %v438_v4   ;;  %v1809_v59 = vld [vmem:[%s1952_s7 + $0x18] sm:$0xff] (!%p390_p9)  ;;  %v837_v16 = vld [vmem:[%s1953_s8] sm:$0xff] (!%p390_p9)  ;;  %v838_v17 = vld [vmem:[%s1953_s8 + $0x8] sm:$0xff] (!%p390_p9) }
  0x18   : > { %s433_s22 = scalar_select %p432_p10, %s1686_s29, 1 }
  0x19   : > { %s1594_s29 = smov [#allocation2]  }
  0x1a   : > { %s1306_s30 = sshll.u32 %s433_s22, 3  ;;  %1508 = vset.pattern.permute.xlu1 %v1590_v8  ;;  %s1242_s22 = sshll.u32 %s1853_s16, 4  ;;  %s1902_s22 = int_to_ptr.vmem [resolvable:$true] %s1242_s22 }
  0x1b   : > { %s435_s20 = scalar_lea.vmem %s1965_s0, %s1306_s30  ;;  %588 = vperm.xlu1 %1508, %v442_v6   ;;  %1507 = vset.pattern.permute.xlu0 %v1590_v8  ;;  %s1900_s30 = scalar_lea.hbm %s1958_s13, %s1328_s23 }
  0x1c   : > { %v1725_v3 = vld [vmem:[%s435_s20] sm:$0xff]  ;;  %583 = vperm.xlu0 %1507, %v441_v7   ;;  %s1525_s20 = scalar_lea.vmem %s1902_s22, 128  ;;  %s1529_s21 = sshll.u32 %s1594_s29, 4  ;;  %s1530_s21 = int_to_ptr.vmem [resolvable:$false] %s1529_s21 }
  0x1d   : > { %1367 = vmatprep.subr.msk.mxu0 %vm492_vm1, %v1725_v3  ;;  %v478_v23 = vrot.slane %v1725_v3, %v477_v21  ;;  %v840_v21 = vld [vmem:[%s1953_s8 + $0x18] sm:$0xff]  ;;  %p1526_p11 = scmp.ne.s32.totalorder %s1902_s22, %s1525_s20  ;;  %s1531_s0 = scalar_lea.vmem %s1530_s21, 256 }
  0x1e   : > { %1368 = vmatpush3.msk.msra.mxu0 %vm492_vm1, %v1725_v3  ;;  %p1532_p0 = scmp.lt.s32.totalorder %s1902_s22, %s1530_s21  ;;  %p1533_p1 = scmp.lt.s32.totalorder %s1531_s0, %s1525_s20 }
  0x1f   : > { %1370 = vmatmul.mubr.msk.f32.vlgmr.msra.gmra.mrb[0].mxu0 %vm483_vm0, %v438_v4  ;;  %593 = vperm.xlu1 %1508, %v443_v9   ;;  %p1527_p12 = pnand %p1526_p11, %p1703_p5 }
  0x20   : > { %1372 = vmatprep.mubr.msk.f32.mxu0 %vm483_vm0, %v439_v1  ;;  %598 = vperm.xlu0 %1507, %v444_v10   ;;  %p1534_p2 = por %p1533_p1, %p1532_p0 }
  0x21   : > { %1441 = vmatprep.subr.bf16.mxu0 %v1591_v54  ;;  %p1528_p13 = pneg %p1527_p12 }
  0x23   : > { %1373 = vmatmul.mubr.msk.f32.gmra.mrb[2].mxu0 %vm483_vm0, %v440_v5  ;;  %611 = vperm.xlu1 %1508, %v449_v11   ;;  %p1535_p3 = pnand %p1534_p2, %p1528_p13 }
  0x24   : > { %616 = vperm.xlu0 %1507, %v450_v12   ;;  %1397 = vmatprep.mubr.msk.f32.mxu0 %vm1592_vm3, %v1593_v55 }
  0x27   : > { %621 = vperm.xlu1 %1508, %v451_v13  }
  0x28   : > { %626 = vperm.xlu0 %1507, %v452_v14  }
  0x2b   : > { %733 = vperm.xlu1 %1508, %v454_v15   ;;  %v453_v15 = vld [vmem:[%s1950_s5] sm:$0x7f] }
  0x2c   : > { %1509 = vset.pattern.permute.xlu0 %v1589_v2 }
  0x2d   : > { %853 = vperm.xlu0 %1509, %v833_v57  }
  0x2f   : > { %1510 = vset.pattern.permute.xlu1 %v1589_v2 }
  0x30   : > { %858 = vperm.xlu1 %1510, %v1795_v56  }
  0x31   : > { %868 = vperm.xlu0 %1509, %v1809_v59  }
  0x34   : > { %863 = vperm.xlu1 %1510, %v1804_v58  }
  0x35   : > { %1512 = vset.pattern.permute.xlu0 %v1590_v8 }
  0x36   : > { %983 = vperm.xlu0 %1512, %v838_v17  }
  0x38   : > { %1511 = vset.pattern.permute.xlu1 %v1590_v8 }
  0x39   : > { %978 = vperm.xlu1 %1511, %v837_v16  }
  0x91   : > { %v468_v20 = vpop.permute.xlu1 %467 }
  0x92   : > { %v458_v19 = vpop.permute.xlu0 %457  ;;  %v481_v35 = vmul.f32 %v478_v23, %v468_v20  ;;  %v845_v20 = vld [vmem:[%s1955_s10] sm:$0xff] }
  0x93   : > { %v479_v26 = vmul.f32 %v478_v23, %v458_v19  ;;  %v839_v19 = vld [vmem:[%s1953_s8 + $0x10] sm:$0xff]  ;;  %1006 = vperm.xlu0 %1512, %v845_v20  }
  0x94   : > { %988 = vperm.xlu1 %1511, %v839_v19  }
  0x95   : > { %v473_v24 = vpop.permute.xlu1 %472 }
  0x96   : > { %v463_v22 = vpop.permute.xlu0 %462  ;;  %v482_v33 = vmul.f32 %v478_v23, %v473_v24  ;;  %v850_v24 = vld [vmem:[%s1957_s12] sm:$0x7f] }
  0x97   : > { %v480_v25 = vmul.f32 %v478_v23, %v463_v22  ;;  %v847_v22 = vld [vmem:[%s1955_s10 + $0x10] sm:$0xff]  ;;  %v846_v23 = vld [vmem:[%s1955_s10 + $0x8] sm:$0xff] }
  0x98   : > { %993 = vperm.xlu1 %1511, %v840_v21   ;;  %1016 = vperm.xlu0 %1512, %v847_v22   ;;  %v842_v22 = vld [vmem:[%s1954_s9 + $0x8] sm:$0xff] }
  0x9a   : > { %v589_v29 = vpop.permute.xlu1 %588 }
  0x9b   : > { %v584_v27 = vpop.permute.xlu0 %583 }
  0x9c   : > { %1011 = vperm.xlu1 %1511, %v846_v23   ;;  %1127 = vperm.xlu0 %1512, %v850_v24   ;;  %v843_v23 = vld [vmem:[%s1954_s9 + $0x10] sm:$0xff]  ;;  %v844_v24 = vld [vmem:[%s1954_s9 + $0x18] sm:$0xff] }
  0x9e   : > { %v594_v44 = vpop.permute.xlu1 %593 }
  0x9f   : > { %v599_v41 = vpop.permute.xlu0 %598 }
  0xa2   : > { %v612_v61 = vpop.permute.xlu1 %611 }
  0xa3   : > { %v617_v60 = vpop.permute.xlu0 %616 }
  0xa6   : > { %v622_v7 = vpop.permute.xlu1 %621 }
  0xa7   : > { %v627_v4 = vpop.permute.xlu0 %626 }
  0xf2   : > { %v1371_v28 = vpop.f32.mrb[0].mxu0 }
  0xf3   : > { %v568_v30 = vadd.f32 %v1371_v28, %v480_v25  ;;  %v562_v31 = vpop.f32.mrb[1].mxu0  ;;  %v848_v25 = vld [vmem:[%s1955_s10 + $0x18] sm:$0xff] }
  0xf4   : > { %v563_v32 = vadd.f32 %v562_v31, %v479_v26  ;;  %1021 = vperm.xlu1 %1511, %v848_v25   ;;  %v734_v26 = vpop.permute.xlu1 %733 }
  0xf5   : > { %v602_v34 = vadd.f32 %v589_v29, %v568_v30 }
  0xf6   : > { %v601_v36 = vadd.f32 %v584_v27, %v563_v32  ;;  %v1374_v37 = vpop.f32.mrb[2].mxu0 }
  0xf7   : > { %v606_v38 = vmax.f32 %v602_v34, 0.0  ;;  %v578_v39 = vadd.f32 %v1374_v37, %v482_v33  ;;  %v572_v40 = vpop.f32.mrb[3].mxu0 }
  0xf8   : > { %v605_v42 = vmax.f32 %v601_v36, 0.0  ;;  %v573_v43 = vadd.f32 %v572_v40, %v481_v35 }
  0xf9   : > { %v604_v45 = vadd.f32 %v599_v41, %v578_v39 }
  0xfa   : > { %v603_v46 = vadd.f32 %v594_v44, %v573_v43  ;;  %v1433_v47 = vpack.c.bf16 %v606_v38, %v605_v42 }
  0xfb   : > { %v608_v48 = vmax.f32 %v604_v45, 0.0 }
  0xfc   : > { %v607_v49 = vmax.f32 %v603_v46, 0.0  ;;  %1434 = vmatprep.subr.bf16.mxu1 %v1433_v47 }
  0xfd   : > { %1436 = vmatpush3.bf16.msra.mxu1 %v1433_v47 }
  0xfe   : > { %v1437_v50 = vpack.c.bf16 %v608_v48, %v607_v49 }
 0x100   : > { %1438 = vmatprep.subr.bf16.mxu1 %v1437_v50 }
 0x101   : > { %1440 = vmatpush3.bf16.msra.mxu1 %v1437_v50 }
 0x104   : > { %1384 = vmatmul.mubr.msk.f32.vlgmr.msra.gmra.mrb[0].mxu1 %vm629_vm2, %v446_v51  ;;  %v841_v51 = vld [vmem:[%s1954_s9] sm:$0xff] }
 0x105   : > { %1386 = vmatprep.mubr.msk.f32.mxu1 %vm629_vm2, %v447_v52  ;;  %v859_v52 = vpop.permute.xlu1 %858 }
 0x108   : > { %1387 = vmatmul.mubr.msk.f32.gmra.mrb[2].mxu1 %vm629_vm2, %v448_v53 }
 0x109   : > { %1416 = vmatprep.mubr.msk.f32.mxu1 %vm629_vm2, %v841_v51  ;;  %v864_v53 = vpop.permute.xlu1 %863 }
 0x1d7   : > { %v1385_v62 = vpop.f32.mrb[0].mxu1 }
 0x1d8   : > { %v714_v63 = vadd.f32 %v1385_v62, %v617_v60  ;;  %v708_v0 = vpop.f32.mrb[1].mxu1 }
 0x1d9   : > { %v709_v1 = vadd.f32 %v708_v0, %v612_v61 }
 0x1da   : > { %v728_v2 = vmax.f32 %v714_v63, 0.0 }
 0x1db   : > { %v727_v5 = vmax.f32 %v709_v1, 0.0  ;;  %v1388_v6 = vpop.f32.mrb[2].mxu1 }
 0x1dc   : > { %v724_v9 = vadd.f32 %v1388_v6, %v627_v4  ;;  %v718_v10 = vpop.f32.mrb[3].mxu1 }
 0x1dd   : > { %v1442_v11 = vpack.c.bf16 %v728_v2, %v727_v5  ;;  %v719_v12 = vadd.f32 %v718_v10, %v622_v7 }
 0x1de   : > { %v730_v13 = vmax.f32 %v724_v9, 0.0 }
 0x1df   : > { %v729_v14 = vmax.f32 %v719_v12, 0.0  ;;  %1443 = vmatpush3.bf16.msra.mxu0 %v1442_v11 }
 0x1e0   : > { %1444 = vmatprep.subr.bf16.mxu0 %v1591_v54 }
 0x1e1   : > { %v1445_v8 = vpack.c.bf16 %v730_v13, %v729_v14 }
 0x1e3   : > { %1446 = vmatpush3.bf16.msra.mxu0 %v1445_v8 }
 0x1e6   : > { %1398 = vmatmul.mubr.msk.f32.vlgmr.msra.gmra.mrb[4].mxu0 %vm629_vm2, %v453_v15 }
 0x1e7   : > { %1402 = vmatprep.mubr.msk.f32.mxu0 %vm483_vm0, %v833_v57  ;;  %v854_v57 = vpop.permute.xlu0 %853 }
 0x1eb   : > { %v869_v60 = vpop.permute.xlu0 %868 }
 0x1ef   : > { %v984_v2 = vpop.permute.xlu0 %983 }
 0x2b9   : > { %v805_v27 = vpop.f32.mrb[4].mxu0 }
 0x2ba   : > { %v806_v28 = vadd.f32 %v805_v27, %v734_v26  ;;  %v1399_v29 = vpop.f32.mrb[5].mxu0  ;;  %v1007_v26 = vpop.permute.xlu0 %1006 }
 0x2bc   : > { %1513 = vtanh.f32 %v806_v28  ;;  %v826_v44 = vrot.slane %v806_v28, 7 }
 0x2c6   : > { %v1514_v30 = vpop.eup %1513 }
 0x2c7   : > { %v810_v31 = vmul.f32 0.1, %v1514_v30 }
 0x2c9   : > { %v811_v32 = vsel %vm492_vm1, %v810_v31, 0.0  ;;  %v819_v33 = vmul.f32 1.442695, %v810_v31 }
 0x2ca   : > { %v812_v34 = vrot.slane %v811_v32, 4 }
 0x2cb   : > { %1515 = vpow2.f32 %v819_v33 }
 0x2cc   : > { %v813_v35 = vadd.f32 %v812_v34, %v811_v32 }
 0x2ce   : > { %v814_v36 = vrot.slane %v813_v35, 2 }
 0x2d0   : > { %v815_v37 = vadd.f32 %v814_v36, %v813_v35  ;;  %v1017_v35 = vpop.permute.xlu0 %1016 }
 0x2d2   : > { %v816_v38 = vrot.slane %v815_v37, 1 }
 0x2d4   : > { %v817_v39 = vadd.f32 %v816_v38, %v815_v37 }
 0x2d5   : > { %v1516_v40 = vpop.eup %1515 }
 0x2d6   : > { %v818_v41 = vsub.f32 0.0, %v817_v39  ;;  %v822_v42 = vrot.slane %v1516_v40, 4 }
 0x2d8   : > { %v824_v43 = vmul.f32 %v822_v42, %v1725_v3  ;;  %v829_v45 = vmul.f32 1.442695, %v818_v41 }
 0x2da   : > { %v828_v46 = vadd.f32 %v826_v44, %v824_v43  ;;  %1517 = vpow2.f32 %v829_v45  ;;  %v849_v43 = vld [vmem:[%s1956_s11] sm:$0x7f] }
 0x2dc   : > { %v880_v47 = vrot.slane %v828_v46, 4  ;;  %1226 = vst [vmem:[%s1853_s16] sm:$0x70] %v828_v46 }
 0x2de   : > { %1400 = vmatprep.subr.msk.mxu0 %vm492_vm1, %v880_v47 }
 0x2df   : > { %1401 = vmatpush3.msk.msra.mxu0 %vm492_vm1, %v880_v47 }
 0x2e0   : > { %1403 = vmatmul.mubr.msk.f32.vlgmr.msra.gmra.mrb[6].mxu0 %vm483_vm0, %v1795_v56  ;;  %1455 = vmatprep.subr.bf16.mxu0 %v1591_v54  ;;  %v873_v56 = vsub.s32 7, %v1773_v18 }
 0x2e1   : > { %1405 = vmatprep.mubr.msk.f32.mxu0 %vm483_vm0, %v1804_v58  ;;  %v979_v58 = vpop.permute.xlu1 %978 }
 0x2e4   : > { %v1518_v48 = vpop.eup %1517  ;;  %1406 = vmatmul.mubr.msk.f32.gmra.mrb[8].mxu0 %vm483_vm0, %v1809_v59 }
 0x2e5   : > { %v831_v49 = vmul.f32 %v1518_v48, %v1725_v3  ;;  %1430 = vmatprep.mubr.msk.f32.mxu0 %vm1592_vm3, %v1593_v55  ;;  %v989_v63 = vpop.permute.xlu1 %988 }
 0x2e7   : > { %v832_v50 = vadd.f32 %v831_v49, %v826_v44  ;;  %v1128_v44 = vpop.permute.xlu0 %1127 }
 0x2e9   : > { %1227 = vst [vmem:[%s1853_s16] sm:$0x80] %v832_v50  ;;  %v874_v59 = vrot.slane %v832_v50, %v873_v56  ;;  %v994_v13 = vpop.permute.xlu1 %993 }
 0x2eb   : > { %v876_v61 = vmul.f32 %v874_v59, %v859_v52  ;;  %v875_v62 = vmul.f32 %v874_v59, %v854_v57  ;;  %v878_v5 = vmul.f32 %v874_v59, %v869_v60  ;;  %v877_v7 = vmul.f32 %v874_v59, %v864_v53 }
 0x2ed   : > { %v1012_v25 = vpop.permute.xlu1 %1011 }
 0x2f1   : > { %v1022_v32 = vpop.permute.xlu1 %1021 }
 0x3b3   : > { %v1404_v55 = vpop.f32.mrb[6].mxu0 }
 0x3b4   : > { %v963_v0 = vadd.f32 %v1404_v55, %v876_v61  ;;  %v957_v1 = vpop.f32.mrb[7].mxu0 }
 0x3b5   : > { %v958_v4 = vadd.f32 %v957_v1, %v875_v62 }
 0x3b6   : > { %v997_v6 = vadd.f32 %v984_v2, %v963_v0 }
 0x3b7   : > { %v996_v9 = vadd.f32 %v979_v58, %v958_v4  ;;  %v1407_v10 = vpop.f32.mrb[8].mxu0 }
 0x3b8   : > { %v1001_v11 = vmax.f32 %v997_v6, 0.0  ;;  %v973_v12 = vadd.f32 %v1407_v10, %v878_v5  ;;  %v967_v18 = vpop.f32.mrb[9].mxu0 }
 0x3b9   : > { %v1000_v14 = vmax.f32 %v996_v9, 0.0  ;;  %v968_v8 = vadd.f32 %v967_v18, %v877_v7 }
 0x3ba   : > { %v999_v15 = vadd.f32 %v994_v13, %v973_v12 }
 0x3bb   : > { %v998_v16 = vadd.f32 %v989_v63, %v968_v8  ;;  %v1447_v17 = vpack.c.bf16 %v1001_v11, %v1000_v14 }
 0x3bc   : > { %v1003_v19 = vmax.f32 %v999_v15, 0.0 }
 0x3bd   : > { %v1002_v20 = vmax.f32 %v998_v16, 0.0  ;;  %1448 = vmatprep.subr.bf16.mxu1 %v1447_v17 }
 0x3be   : > { %1450 = vmatpush3.bf16.msra.mxu1 %v1447_v17 }
 0x3bf   : > { %v1451_v21 = vpack.c.bf16 %v1003_v19, %v1002_v20 }
 0x3c1   : > { %1452 = vmatprep.subr.bf16.mxu1 %v1451_v21 }
 0x3c2   : > { %1454 = vmatpush3.bf16.msra.mxu1 %v1451_v21 }
 0x3c5   : > { %1417 = vmatmul.mubr.msk.f32.vlgmr.msra.gmra.mrb[4].mxu1 %vm629_vm2, %v842_v22 }
 0x3c6   : > { %1419 = vmatprep.mubr.msk.f32.mxu1 %vm629_vm2, %v843_v23 }
 0x3c9   : > { %1420 = vmatmul.mubr.msk.f32.gmra.mrb[6].mxu1 %vm629_vm2, %v844_v24 }
 0x498   : > { %v1418_v27 = vpop.f32.mrb[4].mxu1 }
 0x499   : > { %v1108_v28 = vadd.f32 %v1418_v27, %v1012_v25  ;;  %v1102_v29 = vpop.f32.mrb[5].mxu1 }
 0x49a   : > { %v1103_v30 = vadd.f32 %v1102_v29, %v1007_v26 }
 0x49b   : > { %v1122_v31 = vmax.f32 %v1108_v28, 0.0 }
 0x49c   : > { %v1121_v33 = vmax.f32 %v1103_v30, 0.0  ;;  %v1421_v34 = vpop.f32.mrb[6].mxu1 }
 0x49d   : > { %v1118_v36 = vadd.f32 %v1421_v34, %v1022_v32  ;;  %v1112_v37 = vpop.f32.mrb[7].mxu1 }
 0x49e   : > { %v1456_v38 = vpack.c.bf16 %v1122_v31, %v1121_v33  ;;  %v1113_v39 = vadd.f32 %v1112_v37, %v1017_v35 }
 0x49f   : > { %v1124_v40 = vmax.f32 %v1118_v36, 0.0 }
 0x4a0   : > { %v1123_v41 = vmax.f32 %v1113_v39, 0.0  ;;  %1457 = vmatpush3.bf16.msra.mxu0 %v1456_v38 }
 0x4a1   : > { %1458 = vmatprep.subr.bf16.mxu0 %v1591_v54 }
 0x4a2   : > { %v1459_v42 = vpack.c.bf16 %v1124_v40, %v1123_v41 }
 0x4a4   : > { %1460 = vmatpush3.bf16.msra.mxu0 %v1459_v42 }
 0x4a7   : > { %1431 = vmatmul.mubr.msk.f32.vlgmr.msra.gmra.mrb[10].mxu0 %vm629_vm2, %v849_v43 }
 0x57a   : > { %v1199_v45 = vpop.f32.mrb[10].mxu0 }
 0x57b   : > { %v1200_v46 = vadd.f32 %v1199_v45, %v1128_v44  ;;  %v1432_v47 = vpop.f32.mrb[11].mxu0 }
 0x57d   : > { %1519 = vtanh.f32 %v1200_v46  ;;  %v1217_v62 = vrot.slane %v1200_v46, 3 }
 0x587   : > { %v1520_v48 = vpop.eup %1519 }
 0x588   : > { %v1204_v49 = vmul.f32 0.1, %v1520_v48 }
 0x58a   : > { %v1205_v50 = vsel %vm492_vm1, %v1204_v49, 0.0  ;;  %v1213_v51 = vmul.f32 1.442695, %v1204_v49 }
 0x58b   : > { %v1206_v54 = vrot.slane %v1205_v50, 4 }
 0x58c   : > { %1521 = vpow2.f32 %v1213_v51 }
 0x58d   : > { %v1207_v52 = vadd.f32 %v1206_v54, %v1205_v50 }
 0x58f   : > { %v1208_v53 = vrot.slane %v1207_v52, 2 }
 0x591   : > { %v1209_v56 = vadd.f32 %v1208_v53, %v1207_v52 }
 0x593   : > { %v1210_v57 = vrot.slane %v1209_v56, 1 }
 0x595   : > { %v1211_v58 = vadd.f32 %v1210_v57, %v1209_v56 }
 0x596   : > { %v1522_v59 = vpop.eup %1521 }
 0x597   : > { %v1212_v60 = vsub.f32 0.0, %v1211_v58  ;;  %v1215_v61 = vmul.f32 %v1522_v59, %v1725_v3 }
 0x599   : > { %v1219_v63 = vadd.f32 %v1217_v62, %v1215_v61  ;;  %v1220_v55 = vmul.f32 1.442695, %v1212_v60 }
 0x59b   : > { %1523 = vpow2.f32 %v1220_v55  ;;  %1224 = vst [vmem:[%s1853_s16] sm:$0x7] %v1219_v63 }
 0x5a5   : > { %v1524_v0 = vpop.eup %1523 }
 0x5a6   : > { %v1222_v1 = vmul.f32 %v1524_v0, %v1725_v3 }
 0x5a8   : > { %v1223_v2 = vadd.f32 %v1222_v1, %v1217_v62 }
 0x5aa   : > { %1225 = vst [vmem:[%s1853_s16] sm:$0x8] %v1223_v2 }
 0x5ab   : > { %1538 = shalt.err (!%p1535_p3)
}
 0x5ac   : > { %s1539_s27 = scalar_lea.hbm %s1900_s30, 128  ;;  %s1543_s24 = scalar_lea.hbm %s1958_s13, 256 }
 0x5ad   : > { %p1540_p4 = scmp.ne.s32.totalorder %s1900_s30, %s1539_s27  ;;  %p1544_p9 = scmp.lt.u32.totalorder %s1900_s30, %s1958_s13 }
 0x5ae   : > { %p1545_p10 = scmp.lt.u32.totalorder %s1543_s24, %s1539_s27  ;;  %p1547_p12 = scmp.lt.u32.totalorder %s1539_s27, %s1900_s30 }
 0x5af   : > { %p1541_p7 = pnand %p1540_p4, %p1703_p5 }
 0x5b0   : > { %p1546_p11 = por %p1545_p10, %p1544_p9 }
 0x5b1   : > { %p1542_p8 = pneg %p1541_p7 }
 0x5b2   : > { %p1548_p13 = por %p1547_p12, %p1546_p11 }
 0x5b4   : > { %p1549_p0 = pnand %p1548_p13, %p1542_p8 }
 0x5b6   : > { %1552 = shalt.err (!%p1549_p0)
}
 0x5b7   : > { %1461 = dma.vmem_to_hbm [thread:$0]  (%p1703_p5), %s1902_s22, 128, %s1900_s30, %s1229_s15  }
 0x5b8 PF: > { %p1467_p1 = scmp.ge.s32.totalorder %s1587_s28, 2  ;;  %s1254_s0 = sand.u32 1, %s1575_s25  }
 0x5b9   : > { %s1255_s20 = scalar_lea.sflag [#allocation3], %s1254_s0 }
 0x5ba   : > { %p1464_p2 = pnand %p1467_p1, %p1707_p6 }
 0x5bc   : > { %1570 = dma.done.wait (!%p1464_p2), %s1255_s20, 128  }
 0x5bd   : > { %1572 = vsyncadd (!%p1464_p2), %s1255_s20, 4294967168  ;;  %s1966_s21 = sld [smem:[#allocation5_spill]]  ;;  %s1967_s27 = sld [smem:[#allocation6_spill]] }
 0x5be   : > { %p23_p3 = scmp.ge.s32.totalorder %s1690_s14, 4   ;;  %s1968_s25 = smov %s1579_s26 }
 0x5bf   : > { %s1970_s28 = smov %s1690_s14 }
 0x5c0   :  { %25 = sbr.rel (!%p23_p3) target bundleno = 5 (0x5), region = 107 }
 0x5c3   : > { %s1969_s26 = smov %s1966_s21 }
 0x5c7   :  { %1260 = vsyncpa [#allocation3], 1 }
 0x5c8   :  { %1262 = vsyncpa [#allocation3 + $0x1], 1 }

</bundles_post_ra>
